<compile_context>
chip_gen: v5e
topology: v5e:2x2
jax: 0.10.0
libtpu: 0.0.40
codegen_flags: <defaults>
</compile_context>

<pallas_src>
import functools

import jax
import jax.numpy as jnp
from jax.experimental import pallas as pl
from jax.experimental.pallas import tpu as pltpu

_LANE = 128
_VMEM_LIMIT = 48 << 20   # scoped VMEM limit; safe on v5e/v6e (128 MiB) and v7x (64 MiB)
_VMEM_BUDGET = 40 << 20  # what our own buffers may consume (headroom for compiler)


def _round_up(x: int, m: int) -> int:
    return ((x + m - 1) // m) * m


def _pick_tile(total: int, candidates) -> int:
    """Largest candidate that evenly divides `total` (total is a multiple of 128)."""
    for c in candidates:
        if c <= total and total % c == 0:
            return c
    return total


# --------------------------------------------------------------------------
# Kernels
# --------------------------------------------------------------------------
def _svm_skinny_kernel(x_ref, w_ref, b_ref, o_ref):
    """W^T and bias fully VMEM-resident; one x tile -> one output tile.

    x arrives in f32 and is cast to bf16 in-kernel (VPU work hidden under MXU),
    so the wrapper never materializes a bf16 copy of x in HBM.
    """
    x_bf = x_ref[...].astype(w_ref.dtype)
    acc = jnp.dot(x_bf, w_ref[...], preferred_element_type=jnp.float32)
    o_ref[...] = acc + b_ref[...]


def _svm_tiled_kernel(x_ref, w_ref, b_ref, o_ref):
    """General (tm, tn) output tile, reduction over the last grid axis.

    The output block is resident across k (its index_map ignores k), so we
    seed it with the bias at k == 0 and accumulate the matmul directly into it
    — no separate f32 accumulator scratch, no finalize copy+add.
    """
    k = pl.program_id(2)

    @pl.when(k == 0)
    def _():
        o_ref[...] = jnp.broadcast_to(b_ref[...], o_ref.shape)

    o_ref[...] += jnp.dot(
        x_ref[...], w_ref[...], preferred_element_type=jnp.float32
    )


# --------------------------------------------------------------------------
# Forward factory (one-time param prep + shape-specialized pallas_call)
# --------------------------------------------------------------------------
def make_svm_forward(weight, bias, *, compute_dtype=jnp.bfloat16):
    """weight: (C, D) f32 (PyTorch nn.Linear layout), bias: (C,) f32.

    Returns a jitted `forward(x)` computing x @ W^T + b in f32.
    """
    C, D = weight.shape
    Cp = _round_up(C, _LANE)
    Dp = _round_up(D, _LANE)

    # One-time prep: pad, transpose, cast.  Never repeated per forward call.
    w_t = jnp.pad(weight, ((0, Cp - C), (0, Dp - D))).T.astype(compute_dtype)  # (Dp, Cp)
    b2 = jnp.pad(bias, (0, Cp - C)).reshape(1, Cp).astype(jnp.float32)         # (1, Cp)
    w_itemsize = jnp.dtype(compute_dtype).itemsize

    def forward(x):
        B, Din = x.shape
        assert Din == D, f"expected input_size={D}, got {Din}"

        # ---- batch tile: >=2 parallel blocks once B > 256 (feeds both v7x TCs),
        #      multiple of 16 for bf16 sublane packing, capped at 512. ----
        if B <= 256:
            tm = _round_up(B, 16)
        elif B <= 1024:
            tm = 256
        else:
            tm = 512
        Bp = _round_up(B, tm)

        # ---- Skinny-C fast path: whole W^T + bias resident in VMEM. ----
        skinny_bytes = (
            2 * Dp * Cp * w_itemsize      # W^T (count 2x for pipelining buffers)
            + 2 * tm * Dp * 4             # double-buffered f32 x tiles
            + 2 * tm * Cp * 4             # double-buffered f32 output tiles
            + Cp * 4                      # bias
        )
        use_skinny = (Cp <= 512) and (skinny_bytes <= _VMEM_BUDGET)

        if use_skinny:
            xp = x if (Bp == B and Dp == D) else jnp.pad(x, ((0, Bp - B), (0, Dp - D)))
            grid = (Bp // tm,)
            out_padded = pl.pallas_call(
                _svm_skinny_kernel,
                out_shape=jax.ShapeDtypeStruct((Bp, Cp), jnp.float32),
                grid_spec=pltpu.PrefetchScalarGridSpec(
                    num_scalar_prefetch=0,
                    grid=grid,
                    in_specs=[
                        pl.BlockSpec((tm, Dp), lambda i: (i, 0)),   # x tile (f32)
                        pl.BlockSpec((Dp, Cp), lambda i: (0, 0)),   # W^T resident
                        pl.BlockSpec((1, Cp), lambda i: (0, 0)),    # bias resident
                    ],
                    out_specs=pl.BlockSpec((tm, Cp), lambda i: (i, 0)),
                ),
                compiler_params=pltpu.CompilerParams(
                    dimension_semantics=("parallel",),
                    vmem_limit_bytes=_VMEM_LIMIT,
                ),
                cost_estimate=pl.CostEstimate(
                    flops=2 * Bp * Dp * Cp,
                    transcendentals=0,
                    bytes_accessed=(
                        Bp * Dp * 4 + Dp * Cp * w_itemsize + Cp * 4 + Bp * Cp * 4
                    ),
                ),
            )(xp, w_t, b2)
            return out_padded[:B, :C]

        # ---- General tiled path (large C and/or D): big MXU-shaped tiles. ----
        tn = _pick_tile(Cp, (512, 256, 128))
        tk = _pick_tile(Dp, (1024, 512, 256, 128))
        # x is re-read Cp/tn times in this regime, so casting it to bf16 once in
        # the wrapper is the cheaper option here (unlike the skinny path).
        xp = jnp.pad(x, ((0, Bp - B), (0, Dp - D))).astype(compute_dtype)
        grid = (Bp // tm, Cp // tn, Dp // tk)

        out_padded = pl.pallas_call(
            _svm_tiled_kernel,
            out_shape=jax.ShapeDtypeStruct((Bp, Cp), jnp.float32),
            grid_spec=pltpu.PrefetchScalarGridSpec(
                num_scalar_prefetch=0,
                grid=grid,
                in_specs=[
                    pl.BlockSpec((tm, tk), lambda i, j, k: (i, k)),   # x tile
                    pl.BlockSpec((tk, tn), lambda i, j, k: (k, j)),   # W^T tile
                    pl.BlockSpec((1, tn), lambda i, j, k: (0, j)),    # bias tile
                ],
                out_specs=pl.BlockSpec((tm, tn), lambda i, j, k: (i, j)),
            ),
            compiler_params=pltpu.CompilerParams(
                dimension_semantics=("parallel", "parallel", "arbitrary"),
                vmem_limit_bytes=_VMEM_LIMIT,
            ),
            cost_estimate=pl.CostEstimate(
                flops=2 * Bp * Dp * Cp,
                transcendentals=0,
                bytes_accessed=(
                    Bp * Dp * w_itemsize
                    + Dp * Cp * w_itemsize
                    + Cp * 4
                    + Bp * Cp * 4
                ),
            ),
        )(xp, w_t, b2)
        return out_padded[:B, :C]

    return jax.jit(forward)


def init_svm_params(key, input_size, num_classes):
    """Deterministic init mimicking nn.Linear default (uniform +/- 1/sqrt(fan_in))."""
    kw, kb = jax.random.split(key)
    bound = 1.0 / (float(input_size) ** 0.5)
    weight = jax.random.uniform(
        kw, (num_classes, input_size), jnp.float32, -bound, bound
    )
    bias = jax.random.uniform(kb, (num_classes,), jnp.float32, -bound, bound)
    return weight, bias


if __name__ == "__main__":
    key = jax.random.PRNGKey(0)
    k_x, k_p = jax.random.split(key)

    batch, input_size, num_classes = 8, 32, 10
    x = jax.random.normal(k_x, (batch, input_size), jnp.float32)
    weight, bias = init_svm_params(k_p, input_size, num_classes)

    svm_forward = make_svm_forward(weight, bias)
    out = jax.block_until_ready(svm_forward(x))
    assert out.shape == (batch, num_classes)

    # Exact-semantics reference with the same bf16 operand quantization.
    x_q = x.astype(jnp.bfloat16).astype(jnp.float32)
    w_q = weight.astype(jnp.bfloat16).astype(jnp.float32)
    ref_bf16 = x_q @ w_q.T + bias
    assert jnp.allclose(out, ref_bf16, atol=1e-4, rtol=1e-4)

    # Loose check against the full-precision PyTorch-equivalent math.
    ref_f32 = x @ weight.T + bias
    assert jnp.allclose(out, ref_f32, atol=5e-2, rtol=5e-2)

    print("KERNEL_OK")
</pallas_src>

<mosaic_0001>
module attributes {stable_mosaic.version = 11 : i64} {
  func.func @_svm_skinny_kernel(%arg0: i32, %arg1: memref<16x128xf32, #tpu.memory_space<vmem>>, %arg2: memref<128x128xbf16, #tpu.memory_space<vmem>>, %arg3: memref<1x128xf32, #tpu.memory_space<vmem>>, %arg4: memref<16x128xf32, #tpu.memory_space<vmem>>) attributes {dimension_semantics = [#tpu.dimension_semantics<parallel>], iteration_bounds = array<i64: 1>, scalar_prefetch = 0 : i64, scratch_operands = 0 : i64, tpu.core_type = #tpu.core_type<tc>, window_params = [{transform_indices = @transform_0, window_bounds = array<i64: 16, 128>}, {pipeline_mode = #tpu.pipeline_mode<synchronous>, transform_indices = @transform_1, window_bounds = array<i64: 128, 128>}, {pipeline_mode = #tpu.pipeline_mode<synchronous>, transform_indices = @transform_2, window_bounds = array<i64: 1, 128>}, {transform_indices = @transform_3, window_bounds = array<i64: 16, 128>}]} {
    %c0 = arith.constant 0 : index
    %c0_0 = arith.constant 0 : index
    %0 = vector.load %arg1[%c0, %c0_0] : memref<16x128xf32, #tpu.memory_space<vmem>>, vector<16x128xf32>
    %1 = arith.truncf %0 : vector<16x128xf32> to vector<16x128xbf16>
    %c0_1 = arith.constant 0 : index
    %c0_2 = arith.constant 0 : index
    %2 = vector.load %arg2[%c0_1, %c0_2] : memref<128x128xbf16, #tpu.memory_space<vmem>>, vector<128x128xbf16>
    %cst = arith.constant dense<0.000000e+00> : vector<16x128xf32>
    %3 = tpu.matmul %1, %2, %cst {dimension_numbers = #tpu.dot_dimension_numbers<[1], [0], [0], [1], [0, 0, 1, 1], [], []>} : vector<16x128xbf16>, vector<128x128xbf16>, vector<16x128xf32> -> vector<16x128xf32>
    %c0_3 = arith.constant 0 : index
    %c0_4 = arith.constant 0 : index
    %4 = vector.load %arg3[%c0_3, %c0_4] : memref<1x128xf32, #tpu.memory_space<vmem>>, vector<1x128xf32>
    %5 = vector.broadcast %4 : vector<1x128xf32> to vector<16x128xf32>
    %6 = arith.addf %3, %5 : vector<16x128xf32>
    %c0_5 = arith.constant 0 : index
    %c0_6 = arith.constant 0 : index
    %7 = vector.load %arg4[%c0_5, %c0_6] : memref<16x128xf32, #tpu.memory_space<vmem>>, vector<16x128xf32>
    tpu.vector_store %arg4[%c0_5, %c0_6], %6 {strides = array<i32>} : memref<16x128xf32, #tpu.memory_space<vmem>>, vector<16x128xf32>,
    return
  }
  func.func @transform_0(%arg0: i32) -> (i32, i32) {
    %c0_i32 = arith.constant 0 : i32
    %c0_i32_0 = arith.constant 0 : i32
    return %arg0, %c0_i32 : i32, i32
  }
  func.func @transform_1(%arg0: i32) -> (i32, i32) {
    %c0_i32 = arith.constant 0 : i32
    %c0_i32_0 = arith.constant 0 : i32
    %c0_i32_1 = arith.constant 0 : i32
    return %c0_i32, %c0_i32_0 : i32, i32
  }
  func.func @transform_2(%arg0: i32) -> (i32, i32) {
    %c0_i32 = arith.constant 0 : i32
    %c0_i32_0 = arith.constant 0 : i32
    %c0_i32_1 = arith.constant 0 : i32
    return %c0_i32, %c0_i32_0 : i32, i32
  }
  func.func @transform_3(%arg0: i32) -> (i32, i32) {
    %c0_i32 = arith.constant 0 : i32
    %c0_i32_0 = arith.constant 0 : i32
    return %arg0, %c0_i32 : i32, i32
  }
}

</mosaic_0001>

<bundles_post_ra>
// kernel: forward.1
= control target key start
LH: loop header
LB: loop body
LE: loop exit
PB: predicated region body
PF: predicated region fallthrough
CT: control target
= control target key end

     0   :  { %8 = vsyncpa [#allocation3], 0  ;;  %s192_s15 = smov [#allocation2]   ;;  %s193_s17 = smov 64   ;;  %s233_s0 = inlined_call_operand.vmem [shape: f32[16,128], index: 0, kind: input, shape index: {}]   ;;  %s234_s1 = inlined_call_operand.hbm [shape: bf16[128,128], index: 1, kind: input, shape index: {}]   ;;  %s235_s2 = inlined_call_operand.vmem [shape: f32[1,128], index: 2, kind: input, shape index: {}]   ;;  %s236_s3 = inlined_call_operand.vmem [shape: f32[16,128], index: 3, kind: output, shape index: {}]  }
   0x1   :  { %s15_s14 = sshll.u32 %s234_s1, 4  ;;  %s17_s16 = sshll.u32 %s192_s15, 4  ;;  %s16_s14 = int_to_ptr.hbm [resolvable:$true] %s15_s14  ;;  %s18_s16 = int_to_ptr.vmem [resolvable:$true] %s17_s16 }
   0x2   :  { %s194_s18 = smov 4  }
   0x3   :  { %23 = dma.hbm_to_vmem [thread:$0]  %s16_s14, 1024, %s18_s16, [#allocation3], %s193_s17, %s193_s17, %s194_s18  }
   0x4   :  { %190 = dma.done.wait [#allocation3], 1024  }
   0x5   :  { %191 = vsyncadd [#allocation3], 4294966272  ;;  %v161_v0 = vld [vmem:[#allocation2 + $0x38] sm:$0xff]  ;;  %v160_v1 = vld [vmem:[#allocation2 + $0x30] sm:$0xff] }
   0x6   :  { %101 = vmatpush.bf16.msra.mxu0 %v161_v0  ;;  %v159_v2 = vld [vmem:[#allocation2 + $0x28] sm:$0xff]  ;;  %v158_v3 = vld [vmem:[#allocation2 + $0x20] sm:$0xff]  ;;  %v157_v4 = vld [vmem:[#allocation2 + $0x18] sm:$0xff] }
   0x7   :  { %v156_v5 = vld [vmem:[#allocation2 + $0x10] sm:$0xff]  ;;  %v155_v6 = vld [vmem:[#allocation2 + $0x8] sm:$0xff]  ;;  %v154_v7 = vld [vmem:[#allocation2] sm:$0xff] }
   0x8   :  { %v30_v8 = vld [vmem:[%s233_s0] sm:$0xff]  ;;  %v31_v9 = vld [vmem:[%s233_s0 + $0x8] sm:$0xff] }
   0x9   :  { %v32_v10 = vpack.c.bf16 %v31_v9, %v30_v8  ;;  %v165_v11 = vld [vmem:[%s235_s2] ss:$0 sm:$0xff] }
   0xa   :  { %102 = vmatpush.bf16.msra.mxu0 %v160_v1 }
   0xe   :  { %103 = vmatpush.bf16.msra.mxu0 %v159_v2 }
  0x12   :  { %104 = vmatpush.bf16.msra.mxu0 %v158_v3 }
  0x16   :  { %105 = vmatpush.bf16.msra.mxu0 %v157_v4 }
  0x1a   :  { %106 = vmatpush.bf16.msra.mxu0 %v156_v5 }
  0x1e   :  { %107 = vmatpush.bf16.msra.mxu0 %v155_v6 }
  0x22   :  { %108 = vmatpush.bf16.msra.mxu0 %v154_v7 }
  0x25   :  { %109 = vmatmul.bf16.vlgmr.msra.gmra.mxu0 %v32_v10 }
  0xa2   :  { %v110_v12 = vpop.f32.mrf.mxu0 }
  0xa3   :  { %v111_v13 = vadd.f32 %v165_v11, %v110_v12 }
  0xa5   :  { %115 = vst [vmem:[%s236_s3] sm:$0xff] %v111_v13 }
  0xaa   :  { %v112_v14 = vpop.f32.mrf.mxu0 }
  0xab   :  { %v113_v15 = vadd.f32 %v165_v11, %v112_v14 }
  0xad   :  { %116 = vst [vmem:[%s236_s3 + $0x8] sm:$0xff] %v113_v15 }
  0xae   :  { %121 = vsyncpa [#allocation3], 1 }

</bundles_post_ra>
